<compile_context>
chip_gen: v5e
topology: v5e:2x2
jax: 0.10.0
libtpu: 0.0.40
codegen_flags: <defaults>
</compile_context>

<pallas_src>
import functools

import jax
import jax.numpy as jnp
from jax import lax
from jax.experimental import pallas as pl
from jax.experimental.pallas import tpu as pltpu


# ----------------------------------------------------------------------------
# Kernel body
# ----------------------------------------------------------------------------
def _conv1x1_kernel(x_ref, w_ref, b_ref, o_ref, *, precision):
    # x_ref: (Cin, TN)  w_ref: (Cout, Cin)  b_ref: (Cout, 1)  o_ref: (Cout, TN)
    acc = jnp.dot(w_ref[...], x_ref[...],
                  preferred_element_type=jnp.float32, precision=precision)
    o_ref[...] = (acc + b_ref[...].astype(jnp.float32)).astype(o_ref.dtype)


# ----------------------------------------------------------------------------
# Adaptive pixel-tile selection
# ----------------------------------------------------------------------------
_LANE = 128
_TN_CAP = 8192                    # keep single-step latency / unroll sane
_VMEM_STREAM_BUDGET = 12 << 20    # bytes for the buffered in+out streams
_STREAM_BUFFERS = 3               # Buffered(3) on both streaming specs


def _pick_pixel_tile(n_pix, cin, cout, dtype_size, bsz):
    """Lane-dense tile for the flattened pixel axis.

    Must be a multiple of 128 or equal to the full axis length.  Sized so each
    grid step carries enough HBM traffic to amortize per-step overhead while
    the buffered streams stay within every generation's scoped-VMEM default
    (v5e 16 MiB / v6e 32 MiB / v7x 32 MiB).
    """
    per_col = (cin + cout) * dtype_size
    tn = _VMEM_STREAM_BUDGET // (_STREAM_BUFFERS * max(per_col, 1))
    tn = max(_LANE, min(_TN_CAP, (tn // _LANE) * _LANE))
    if n_pix > tn:
        return tn                              # >= 2 pixel blocks per batch
    if bsz >= 2 or n_pix < 2 * _LANE:
        return n_pix                           # full axis: always legal
    # bsz == 1 and a single pixel block would leave one v7x TensorCore idle:
    # split into >= 2 tiles (each a multiple of 128; last may be partial).
    return max(_LANE, ((n_pix // 2) // _LANE) * _LANE)


# ----------------------------------------------------------------------------
# One-time probe: does this JAX accept pipeline_mode=pl.Buffered(3) on
# auto-pipelined BlockSpecs (inputs AND outputs)?  Probed eagerly, outside jit.
# ----------------------------------------------------------------------------
_BUFFERED_RESOLVED = False
_BUFFERED_MODE = None


def _probe_buffered():
    def k(x_ref, o_ref):
        o_ref[...] = x_ref[...] + 1.0

    try:
        mode = pl.Buffered(3)
        in_spec = pl.BlockSpec((8, 128), lambda i: (0, i), pipeline_mode=mode)
        out_spec = pl.BlockSpec((8, 128), lambda i: (0, i), pipeline_mode=mode)
        x = jnp.zeros((8, 256), jnp.float32)
        y = pl.pallas_call(
            k,
            out_shape=jax.ShapeDtypeStruct((8, 256), jnp.float32),
            grid=(2,),
            in_specs=[in_spec],
            out_specs=out_spec,
        )(x)
        jax.block_until_ready(y)
        return mode
    except Exception:
        return None


def _get_buffered_mode():
    global _BUFFERED_RESOLVED, _BUFFERED_MODE
    if not _BUFFERED_RESOLVED:
        _BUFFERED_MODE = _probe_buffered()
        _BUFFERED_RESOLVED = True
    return _BUFFERED_MODE


# ----------------------------------------------------------------------------
# Wrapper: InflatedConv3d(C_in, C_out, kernel=1, padding=0) forward
# ----------------------------------------------------------------------------
def inflated_conv3d_1x1(x, w, b, *, tn_override=None):
    """x: (B, C_in, F, H, W) NCFHW; w: (C_out, C_in); b: (C_out,)."""
    bsz, cin, f, h, wdt = x.shape
    cout = w.shape[0]
    n_pix = f * h * wdt
    dsize = jnp.dtype(x.dtype).itemsize

    x3 = x.reshape(bsz, cin, n_pix)          # free reshape: native layout kept
    b2 = b.reshape(cout, 1)                  # broadcast over the lane axis

    tn = (tn_override if tn_override is not None
          else _pick_pixel_tile(n_pix, cin, cout, dsize, bsz))
    grid = (bsz, pl.cdiv(n_pix, tn))

    # Memory-bound op => extra MXU passes for f32 exactness are free slack.
    precision = (lax.Precision.HIGHEST if x.dtype == jnp.dtype(jnp.float32)
                 else lax.Precision.DEFAULT)

    cost = pl.CostEstimate(
        flops=2 * bsz * cout * cin * n_pix,
        transcendentals=0,
        bytes_accessed=(bsz * (cin + cout) * n_pix + cout * cin + cout) * dsize,
    )

    x_map = lambda bb, i: (bb, 0, i)
    o_map = lambda bb, i: (bb, 0, i)
    mode = _get_buffered_mode()
    if mode is not None:
        x_spec = pl.BlockSpec((None, cin, tn), x_map, pipeline_mode=mode)
        o_spec = pl.BlockSpec((None, cout, tn), o_map, pipeline_mode=mode)
    else:
        x_spec = pl.BlockSpec((None, cin, tn), x_map)
        o_spec = pl.BlockSpec((None, cout, tn), o_map)

    y3 = pl.pallas_call(
        functools.partial(_conv1x1_kernel, precision=precision),
        out_shape=jax.ShapeDtypeStruct((bsz, cout, n_pix), x.dtype),
        grid=grid,
        in_specs=[
            x_spec,
            # weight / bias: constant index_map -> resident across the grid
            pl.BlockSpec((cout, cin), lambda bb, i: (0, 0)),
            pl.BlockSpec((cout, 1), lambda bb, i: (0, 0)),
        ],
        out_specs=o_spec,
        compiler_params=pltpu.CompilerParams(
            dimension_semantics=("parallel", "parallel")),
        cost_estimate=cost,
    )(x3, w, b2)

    return y3.reshape(bsz, cout, f, h, wdt)


# ----------------------------------------------------------------------------
# Full module (jitted as one block so the many tiny launches aren't
# dispatch-bound)
# ----------------------------------------------------------------------------
def _forward_impl(params, down_block_res_samples, mid_block_sample):
    input_wb, conv_wbs, mid_wb = params
    outputs = []
    w, b = input_wb
    outputs.append(inflated_conv3d_1x1(down_block_res_samples[0], w, b))
    for res_sample, (w, b) in zip(down_block_res_samples[1:], conv_wbs):
        outputs.append(inflated_conv3d_1x1(res_sample, w, b))
    w, b = mid_wb
    outputs.append(inflated_conv3d_1x1(mid_block_sample, w, b))
    return outputs


class ControlNetZeroConvBlock3d:
    """JAX/Pallas port of the PyTorch module (zero-initialized 1x1 convs)."""

    def __init__(self,
                 block_out_channels=(32, 64, 128, 128),
                 down_block_types=('CrossAttnDownBlock3D',
                                   'CrossAttnDownBlock3D',
                                   'CrossAttnDownBlock3D',
                                   'DownBlock2D'),
                 layers_per_block=2,
                 dtype=jnp.float32):
        # set_zero_parameters => all weights/biases are deterministically zero.
        def zero_conv_params(c):
            return (jnp.zeros((c, c), dtype), jnp.zeros((c,), dtype))

        self.input_zero_conv = zero_conv_params(block_out_channels[0])
        zero_convs = []
        for i, _ in enumerate(down_block_types):
            out_c = block_out_channels[i]
            is_final = i == len(block_out_channels) - 1
            for _ in range(layers_per_block):
                zero_convs.append(zero_conv_params(out_c))
            if not is_final:
                zero_convs.append(zero_conv_params(out_c))
        self.zero_convs = tuple(zero_convs)
        self.mid_zero_conv = zero_conv_params(block_out_channels[-1])

        _get_buffered_mode()                  # resolve the probe outside jit
        self._forward = jax.jit(_forward_impl)

    def __call__(self, down_block_res_samples, mid_block_sample):
        params = (self.input_zero_conv, self.zero_convs, self.mid_zero_conv)
        return self._forward(params, tuple(down_block_res_samples),
                             mid_block_sample)


# ----------------------------------------------------------------------------
# Pure-JAX reference (computed in f32, exact-precision einsum)
# ----------------------------------------------------------------------------
def _ref_conv1x1(x, w, b):
    y = jnp.einsum('oc,bcfhw->bofhw',
                   w.astype(jnp.float32), x.astype(jnp.float32),
                   precision=lax.Precision.HIGHEST)
    return y + b.astype(jnp.float32)[None, :, None, None, None]


if __name__ == "__main__":
    key = jax.random.PRNGKey(0)

    # ---- standalone kernel correctness vs a pure-JAX reference -------------
    # (random weights so the matmul path itself is verified, not just zeros)
    k1, k2, k3, k4, k5, k6, k7, key = jax.random.split(key, 8)

    # Case 1: non-multiple-of-128 pixel axis, forced small tile -> exercises
    # the multi-block + partial-last-block path.  n_pix = 2*10*15 = 300.
    B, C, F, H, W = 2, 32, 2, 10, 15
    x = jax.random.normal(k1, (B, C, F, H, W), jnp.float32)
    wgt = jax.random.normal(k2, (C, C), jnp.float32) / jnp.sqrt(C)
    bias = jax.random.normal(k3, (C,), jnp.float32)
    y = inflated_conv3d_1x1(x, wgt, bias, tn_override=128)
    y_ref = _ref_conv1x1(x, wgt, bias)
    assert y.shape == y_ref.shape
    assert bool(jnp.allclose(y, y_ref, rtol=1e-4, atol=1e-4)), \
        float(jnp.max(jnp.abs(y - y_ref)))

    # Case 2: B=1, single-tile-sized pixel axis -> exercises the v7x megacore
    # split (tn shrinks so grid has >= 2 pixel blocks).  C=128, n_pix=2048.
    B2, C2, F2, H2, W2 = 1, 128, 2, 32, 32
    x2 = jax.random.normal(k4, (B2, C2, F2, H2, W2), jnp.float32)
    wgt2 = jax.random.normal(k5, (C2, C2), jnp.float32) / jnp.sqrt(C2)
    bias2 = jnp.zeros((C2,), jnp.float32)
    y2 = inflated_conv3d_1x1(x2, wgt2, bias2)
    y2_ref = _ref_conv1x1(x2, wgt2, bias2)
    assert bool(jnp.allclose(y2, y2_ref, rtol=1e-4, atol=1e-4)), \
        float(jnp.max(jnp.abs(y2 - y2_ref)))

    # Case 3: bf16 activations (f32 accumulate, bf16 store).
    B3, C3, F3, H3, W3 = 1, 64, 2, 16, 16
    x3 = jax.random.normal(k6, (B3, C3, F3, H3, W3), jnp.float32)
    wgt3 = jax.random.normal(k7, (C3, C3), jnp.float32) / jnp.sqrt(C3)
    bias3 = jnp.zeros((C3,), jnp.float32)
    y3 = inflated_conv3d_1x1(x3.astype(jnp.bfloat16),
                             wgt3.astype(jnp.bfloat16),
                             bias3.astype(jnp.bfloat16))
    assert y3.dtype == jnp.bfloat16
    y3_ref = _ref_conv1x1(x3.astype(jnp.bfloat16), wgt3, bias3)
    assert bool(jnp.allclose(y3.astype(jnp.float32), y3_ref,
                             rtol=3e-2, atol=3e-2)), \
        float(jnp.max(jnp.abs(y3.astype(jnp.float32) - y3_ref)))

    # ---- full module forward (zero-initialized convs), single jit ----------
    block_out_channels = (32, 64, 128, 128)
    layers_per_block = 2
    Bm, Fm = 2, 2
    base_res = 16

    # Build down_block_res_samples exactly as a UNet down path would produce:
    # sample 0 at (c0, full res), then per block: layers_per_block samples at
    # that block's channels/res, plus a downsampled one if not the last block.
    shapes = [(Bm, block_out_channels[0], Fm, base_res, base_res)]
    res = base_res
    for i, c in enumerate(block_out_channels):
        is_final = i == len(block_out_channels) - 1
        for _ in range(layers_per_block):
            shapes.append((Bm, c, Fm, res, res))
        if not is_final:
            res //= 2
            shapes.append((Bm, c, Fm, res, res))
    mid_shape = (Bm, block_out_channels[-1], Fm, res, res)

    keys = jax.random.split(key, len(shapes) + 1)
    down_block_res_samples = [
        jax.random.normal(k, s, dtype=jnp.float32)
        for k, s in zip(keys[:-1], shapes)
    ]
    mid_block_sample = jax.random.normal(keys[-1], mid_shape, dtype=jnp.float32)

    model = ControlNetZeroConvBlock3d(block_out_channels=block_out_channels,
                                      layers_per_block=layers_per_block)
    outputs = model(down_block_res_samples, mid_block_sample)
    outputs = jax.block_until_ready(outputs)

    # Reference semantics: zero-initialized 1x1 convs => zero outputs with the
    # same shapes/dtypes as their inputs.
    ref_inputs = down_block_res_samples + [mid_block_sample]
    assert len(outputs) == len(ref_inputs)
    for out, inp in zip(outputs, ref_inputs):
        assert out.shape == inp.shape, (out.shape, inp.shape)
        assert out.dtype == inp.dtype
        assert bool(jnp.all(out == 0.0))

    print("KERNEL_OK")
</pallas_src>

<mosaic_0001>
module attributes {stable_mosaic.version = 11 : i64} {
  func.func @_conv1x1_kernel(%arg0: i32, %arg1: i32, %arg2: memref<1x32x128xf32, #tpu.memory_space<vmem>>, %arg3: memref<32x32xf32, #tpu.memory_space<vmem>>, %arg4: memref<32x1xf32, #tpu.memory_space<vmem>>, %arg5: memref<1x32x128xf32, #tpu.memory_space<vmem>>) attributes {dimension_semantics = [#tpu.dimension_semantics<parallel>, #tpu.dimension_semantics<parallel>], iteration_bounds = array<i64: 2, 3>, scalar_prefetch = 0 : i64, scratch_operands = 0 : i64, tpu.core_type = #tpu.core_type<tc>, window_params = [{transform_indices = @transform_0, window_bounds = array<i64: 1, 32, 128>}, {pipeline_mode = #tpu.pipeline_mode<synchronous>, transform_indices = @transform_1, window_bounds = array<i64: 32, 32>}, {pipeline_mode = #tpu.pipeline_mode<synchronous>, transform_indices = @transform_2, window_bounds = array<i64: 32, 1>}, {transform_indices = @transform_3, window_bounds = array<i64: 1, 32, 128>}]} {
    %c0 = arith.constant 0 : index
    %c0_0 = arith.constant 0 : index
    %0 = vector.load %arg3[%c0, %c0_0] : memref<32x32xf32, #tpu.memory_space<vmem>>, vector<32x32xf32>
    %c0_1 = arith.constant 0 : index
    %c0_2 = arith.constant 0 : index
    %c0_3 = arith.constant 0 : index
    %1 = vector.load %arg2[%c0_1, %c0_2, %c0_3] : memref<1x32x128xf32, #tpu.memory_space<vmem>>, vector<1x32x128xf32>
    %2 = vector.shape_cast %1 : vector<1x32x128xf32> to vector<32x128xf32>
    %cst = arith.constant dense<0.000000e+00> : vector<32x128xf32>
    %3 = tpu.matmul %0, %2, %cst {dimension_numbers = #tpu.dot_dimension_numbers<[1], [0], [0], [1], [0, 0, 1, 1], [], []>, precision = #tpu.contract_precision<fp32>} : vector<32x32xf32>, vector<32x128xf32>, vector<32x128xf32> -> vector<32x128xf32>
    %c0_4 = arith.constant 0 : index
    %c0_5 = arith.constant 0 : index
    %4 = vector.load %arg4[%c0_4, %c0_5] : memref<32x1xf32, #tpu.memory_space<vmem>>, vector<32x1xf32>
    %5 = vector.broadcast %4 : vector<32x1xf32> to vector<32x128xf32>
    %6 = arith.addf %3, %5 : vector<32x128xf32>
    %c0_6 = arith.constant 0 : index
    %c0_7 = arith.constant 0 : index
    %c0_8 = arith.constant 0 : index
    %7 = vector.load %arg5[%c0_6, %c0_7, %c0_8] : memref<1x32x128xf32, #tpu.memory_space<vmem>>, vector<1x32x128xf32>
    %8 = vector.shape_cast %7 : vector<1x32x128xf32> to vector<32x128xf32>
    %9 = vector.shape_cast %6 : vector<32x128xf32> to vector<1x32x128xf32>
    tpu.vector_store %arg5[%c0_6, %c0_7, %c0_8], %9 {strides = array<i32>} : memref<1x32x128xf32, #tpu.memory_space<vmem>>, vector<1x32x128xf32>,
    return
  }
  func.func @transform_0(%arg0: i32, %arg1: i32) -> (i32, i32, i32) {
    %c0_i32 = arith.constant 0 : i32
    %c0_i32_0 = arith.constant 0 : i32
    return %arg0, %c0_i32, %arg1 : i32, i32, i32
  }
  func.func @transform_1(%arg0: i32, %arg1: i32) -> (i32, i32) {
    %c0_i32 = arith.constant 0 : i32
    %c0_i32_0 = arith.constant 0 : i32
    %c0_i32_1 = arith.constant 0 : i32
    return %c0_i32, %c0_i32_0 : i32, i32
  }
  func.func @transform_2(%arg0: i32, %arg1: i32) -> (i32, i32) {
    %c0_i32 = arith.constant 0 : i32
    %c0_i32_0 = arith.constant 0 : i32
    %c0_i32_1 = arith.constant 0 : i32
    return %c0_i32, %c0_i32_0 : i32, i32
  }
  func.func @transform_3(%arg0: i32, %arg1: i32) -> (i32, i32, i32) {
    %c0_i32 = arith.constant 0 : i32
    %c0_i32_0 = arith.constant 0 : i32
    return %arg0, %c0_i32, %arg1 : i32, i32, i32
  }
}

</mosaic_0001>

<bundles_post_ra>
// kernel: tpu_custom_call.1
= control target key start
LH: loop header
LB: loop body
LE: loop exit
PB: predicated region body
PF: predicated region fallthrough
CT: control target
= control target key end

     0   :  { %8 = vsyncpa [#allocation3], 0  ;;  %s1159_s0 = inlined_call_operand.hbm [shape: f32[2,32,300], index: 0, kind: input, shape index: {}]   ;;  %s1160_s1 = inlined_call_operand.vmem [shape: f32[32,32], index: 1, kind: input, shape index: {}]   ;;  %s1161_s2 = inlined_call_operand.vmem [shape: f32[32,1], index: 2, kind: input, shape index: {}]   ;;  %s1162_s3 = inlined_call_operand.hbm [shape: f32[2,32,300], index: 3, kind: output, shape index: {}]  }
   0x1   :  { %10 = vsyncpa [#allocation3 + $0x1], 0 }
   0x2   :  { %11 = vsyncpa [#allocation4], 0 }
   0x3   :  { %13 = vsyncpa [#allocation4 + $0x1], 0  ;;  %s907_s12 = smov 0   ;;  %s909_s13 = smov 0  }
   0x4   :  { %s911_s14 = smov 0   ;;  %s913_s15 = smov 0  }
   0x5   :  { %s915_s16 = smov 0   ;;  %s917_s17 = smov 0  }
   0x6   :  { %s919_s18 = smov 0   ;;  %s921_s19 = smov 0  }
   0x7 LB: > { %s640_s20 = sadd.s32 4294967295, %s878_s19   ;;  %s641_s21 = sadd.s32 4294967294, %s878_s19   ;;  %s878_s19 = sphi %s921_s19, %s19_s19   ;;  %s874_s18 = sphi %s919_s18, %s1181_s18   ;;  %s870_s17 = sphi %s917_s17, %s1180_s17   ;;  %s866_s16 = sphi %s915_s16, %s1179_s16   ;;  %s862_s15 = sphi %s913_s15, %s1178_s15   ;;  %s858_s14 = sphi %s911_s14, %s1177_s14   ;;  %s854_s13 = sphi %s909_s13, %s1176_s13   ;;  %s850_s12 = sphi %s907_s12, %s1175_s12  }
   0x8   : > { %s28_s22 = sadd.s32 1, %s870_s17  ;;  %s31_s23 = sadd.s32 1, %s874_s18 }
   0x9   : > { %p29_p0 = scmp.ge.s32.totalorder %s28_s22, 3  ;;  %s40_s24 = sadd.s32 1, %s858_s14 }
   0xa   : > { %p47_p1 = scmp.ne.s32.totalorder %s858_s14, %s854_s13  ;;  %p48_p2 = scmp.eq.s32.totalorder %s878_s19, 0 }
   0xb   : > { %s1183_s22 = smov (%p29_p0, %s28_s22), 0  ;;  %s1185_s23 = smov (!%p29_p0, %s31_s23), %s874_s18 }
   0xc   : > { %1165 = sst [smem:[#allocation8_spill]] %s1183_s22  ;;  %s36_s25 = ssub.s32 %s870_s17, %s1183_s22 }
   0xd   : > { %p960_p3 = por %p48_p2, %p47_p1  ;;  %p33_p4 = scmp.ge.s32.totalorder %s1185_s23, 2 }
   0xe   : > { %p53_p5 = scmp.ne.s32.totalorder %s854_s13, %s850_s12  ;;  %p54_p6 = scmp.eq.s32.totalorder %s640_s20, 0 }
   0xf   : > { %p121_p7 = scmp.eq.s32.totalorder %s640_s20, 5  ;;  %s1187_s23 = smov (%p33_p4, %s1185_s23), 0 }
  0x10   : > { %1167 = sst [smem:[#allocation9_spill]] %s1187_s23  ;;  %p968_p8 = por %p54_p6, %p53_p5 }
  0x11   : > { %p972_p9 = por %p121_p7, %p47_p1  ;;  %s35_s29 = ssub.s32 %s874_s18, %s1187_s23 }
  0x12   : > { %p127_p10 = scmp.eq.s32.totalorder %s641_s21, 5  ;;  %s37_s30 = sor.u32 %s36_s25, %s35_s29 }
  0x13   : > { %p38_p11 = scmp.eq.s32.totalorder %s37_s30, 0  ;;  %p675_p13 = scmp.lt.s32.totalorder %s878_s19, 6 }
  0x14   : > { %p978_p12 = por %p127_p10, %p53_p5  ;;  %s153_s5 = sand.u32 1, %s858_s14  }
  0x15   : > { %s985_s6 = scalar_select %p38_p11, %s858_s14, %s40_s24  }
  0x16   : > { %s644_s7 = sshll.u32 %s153_s5, 5  ;;  %s661_s8 = smul.u32 12, %s874_s18 }
  0x17   : > { %1171 = sst [smem:[#allocation10_spill]] %s985_s6  ;;  %s157_s9 = scalar_lea.vmem [#allocation2], %s644_s7 }
  0x18   : > { %s166_s10 = sshll.u32 %s157_s9, 4  ;;  %p668_p0 = pnand %p675_p13, %p960_p3  ;;  %s167_s10 = int_to_ptr.vmem [resolvable:$true] %s166_s10 }
  0x19   : > { %s161_s11 = sadd.s32 %s870_s17, %s661_s8  ;;  %s154_s23 = scalar_lea.sflag [#allocation3], %s153_s5 }
  0x1a   : > { %s645_s20 = sshll.u32 %s161_s11, 3  ;;  %s880_s24 = smov 384  }
  0x1b   : > { %s163_s29 = scalar_lea.hbm %s1159_s0, %s645_s20  ;;  %s881_s22 = smov 128  }
  0x1c   : > { %s164_s30 = sshll.u32 %s163_s29, 4  ;;  %s882_s6 = smov 8   ;;  %s165_s30 = int_to_ptr.hbm [resolvable:$true] %s164_s30 }
  0x1d   : > { %670 = dma.hbm_to_vmem [thread:$0]  (!%p668_p0), %s165_s30, 512, %s167_s10, %s154_s23, %s880_s24, %s881_s22, %s882_s6  }
  0x1e   : > { %p646_p1 = scmp.ge.s32.totalorder %s878_s19, 1  ;;  %p174_p2 = scmp.lt.s32.totalorder %s878_s19, 7 }
  0x20   : > { %p175_p4 = pnand %p646_p1, %p174_p2 }
  0x21   : > { %s997_s26 = sand.u32 (!%p175_p4), 1, %s854_s13  }
  0x22   : > { %178 = sbr.rel (%p175_p4) target bundleno = 242 (0xf2), region = 32  ;;  %s647_s7 = sshll.u32 (!%p175_p4), %s997_s26, 5 }
  0x23   : > { %s181_s8 = scalar_lea.sflag (!%p175_p4), [#allocation3], %s997_s26  ;;  %s184_s9 = scalar_lea.vmem (!%p175_p4), [#allocation2], %s647_s7 }
  0x27   : > { %841 = dma.done.wait (%p968_p8), %s181_s8, 512  }
  0x28   : > { %843 = vsyncadd (%p968_p8), %s181_s8, 4294966784  ;;  %v883_v0 = vmov 0   ;;  %vm240_vm0 = vcmask 261120   ;;  %v215_v1 = vld [vmem:[%s184_s9 + $0x18] sm:$0xff]  ;;  %v214_v2 = vld [vmem:[%s184_s9 + $0x10] sm:$0xff]  ;;  %s1108_s23 = scalar_lea.vmem [#allocation5], %s647_s7 }
  0x29   : > { %749 = vset.pattern.permute.xlu1 %v883_v0  ;;  %748 = vset.pattern.permute.xlu0 %v883_v0  ;;  %v213_v3 = vld [vmem:[%s184_s9 + $0x8] sm:$0xff]  ;;  %v1007_v4 = vand.u32 4294901760, %v215_v1  ;;  %v1009_v5 = vand.u32 4294901760, %v214_v2  ;;  %v212_v7 = vld [vmem:[%s184_s9] sm:$0xff]  ;;  %v210_v8 = vld [vmem:[%s1160_s1 + $0x10] sm:$0xff]  ;;  %s662_s27 = smul.u32 12, %s866_s16 }
  0x2a   : > { %v1011_v6 = vand.u32 4294901760, %v213_v3  ;;  %v211_v9 = vld [vmem:[%s1160_s1 + $0x18] sm:$0xff]  ;;  %v1019_v10 = vand.u32 4294901760, %v212_v7  ;;  %v248_v11 = vsel %vm240_vm0, %v210_v8, 0  ;;  %v208_v13 = vld [vmem:[%s1160_s1] sm:$0xff]  ;;  %v218_v14 = vld [vmem:[%s1161_s2 + $0x10] sm:$0xff] }
  0x2b   : > { %v251_v12 = vsel %vm240_vm0, %v211_v9, 0  ;;  %v209_v15 = vld [vmem:[%s1160_s1 + $0x8] sm:$0xff]  ;;  %653 = vmatpush.msra.mxu2 %v1007_v4  ;;  %v319_v16 = vsub.f32 %v215_v1, %v1007_v4  ;;  %v1034_v17 = vand.u32 4294901760, %v248_v11  ;;  %v325_v18 = vsub.f32 %v214_v2, %v1009_v5  ;;  %266 = vmatpush.msra.mxu0 %v1007_v4  ;;  %v216_v28 = vld [vmem:[%s1161_s2] sm:$0xff]  ;;  %v219_v54 = vld [vmem:[%s1161_s2 + $0x18] sm:$0xff]  ;;  %s546_s7 = sadd.s32 %s862_s15, %s662_s27  ;;  %s549_s11 = sshll.u32 %s1108_s23, 4  ;;  %s550_s11 = int_to_ptr.vmem [resolvable:$true] %s549_s11 }
  0x2c   : > { %v331_v19 = vsub.f32 %v213_v3, %v1011_v6  ;;  %v1040_v20 = vsub.f32 %v212_v7, %v1019_v10  ;;  %v1042_v21 = vand.u32 4294901760, %v251_v12  ;;  %v242_v22 = vsel %vm240_vm0, %v208_v13, 0  ;;  %232 = vperm.xlu1 %749, %v218_v14   ;;  %222 = vperm.xlu0 %748, %v216_v28   ;;  %v217_v56 = vld [vmem:[%s1161_s2 + $0x8] sm:$0xff]  ;;  %s650_s5 = sshll.u32 %s546_s7, 3  ;;  %s536_s20 = scalar_lea.sflag [#allocation4], %s997_s26 }
  0x2d   : > { %v245_v23 = vsel %vm240_vm0, %v209_v15, 0  ;;  %654 = vmatpush.msra.mxu2 %v1009_v5  ;;  %v320_v24 = vand.u32 4294901760, %v319_v16  ;;  %v1048_v25 = vsub.f32 %v248_v11, %v1034_v17  ;;  %v326_v26 = vand.u32 4294901760, %v325_v18  ;;  %268 = vmatpush.msra.mxu0 %v1009_v5  ;;  %s548_s10 = scalar_lea.hbm %s1162_s3, %s650_s5  ;;  %s800_s24 = scalar_lea.hbm %s1162_s3, 192 }
  0x2e   : > { %v332_v27 = vand.u32 4294901760, %v331_v19  ;;  %v338_v29 = vand.u32 4294901760, %v1040_v20  ;;  %v1056_v30 = vsub.f32 %v251_v12, %v1042_v21  ;;  %v1058_v31 = vand.u32 4294901760, %v242_v22  ;;  %s551_s15 = sshll.u32 %s548_s10, 4  ;;  %s552_s15 = int_to_ptr.hbm [resolvable:$true] %s551_s15 }
  0x2f   : > { %v1060_v32 = vand.u32 4294901760, %v245_v23  ;;  %655 = vmatpush.msra.mxu2 %v1011_v6  ;;  %v321_v33 = vsub.f32 %v319_v16, %v320_v24  ;;  %v291_v34 = vand.u32 4294901760, %v1048_v25  ;;  %v327_v35 = vsub.f32 %v325_v18, %v326_v26  ;;  %270 = vmatpush.msra.mxu0 %v1011_v6  ;;  %s794_s21 = sshra.s32 %s552_s15, 4  ;;  %s795_s21 = int_to_ptr.hbm [resolvable:$true] %s794_s21 }
  0x30   : > { %v333_v36 = vsub.f32 %v331_v19, %v332_v27  ;;  %v339_v37 = vsub.f32 %v1040_v20, %v338_v29  ;;  %v274_v38 = vsub.f32 %v242_v22, %v1058_v31  ;;  %v299_v43 = vand.u32 4294901760, %v1056_v30  ;;  %s796_s25 = scalar_lea.hbm %s795_s21, 32  ;;  %p801_p7 = scmp.lt.s32.totalorder %s795_s21, %s1162_s3 }
  0x31   : > { %v282_v39 = vsub.f32 %v245_v23, %v1060_v32  ;;  %656 = vmatpush.msra.mxu2 %v1019_v10  ;;  %v322_v40 = vand.u32 4294901760, %v321_v33  ;;  %v292_v41 = vsub.f32 %v1048_v25, %v291_v34  ;;  %v328_v42 = vand.u32 4294901760, %v327_v35  ;;  %272 = vmatpush.msra.mxu0 %v1019_v10  ;;  %p797_p3 = scmp.ne.s32.totalorder %s795_s21, %s796_s25  ;;  %p802_p8 = scmp.lt.s32.totalorder %s800_s24, %s796_s25 }
  0x32   : > { %v275_v44 = vand.u32 4294901760, %v274_v38  ;;  %v334_v46 = vand.u32 4294901760, %v333_v36  ;;  %v340_v49 = vand.u32 4294901760, %v339_v37  ;;  %v300_v50 = vsub.f32 %v1056_v30, %v299_v43 }
  0x33   : > { %373 = vmatpush.msrb.mxu2 %v319_v16  ;;  %464 = vmatpush.msrb.mxu0 %v320_v24  ;;  %v293_v45 = vand.u32 4294901760, %v292_v41  ;;  %v283_v48 = vand.u32 4294901760, %v282_v39  ;;  %p798_p5 = pnand %p797_p3, %p972_p9  ;;  %p803_p10 = por %p802_p8, %p801_p7 }
  0x34   : > { %657 = vmatpush.msra.mxu3 %v322_v40  ;;  %323 = vmatpush.msra.mxu1 %v322_v40  ;;  %v276_v47 = vsub.f32 %v274_v38, %v275_v44  ;;  %v301_v53 = vand.u32 4294901760, %v300_v50 }
  0x35   : > { %376 = vmatpush.msrb.mxu2 %v325_v18  ;;  %468 = vmatpush.msrb.mxu0 %v326_v26  ;;  %v284_v52 = vsub.f32 %v282_v39, %v283_v48  ;;  %p799_p6 = pneg %p798_p5 }
  0x36   : > { %294 = vmatmul.f32.vlgmr.msra.gmra.mxu2 %v293_v45  ;;  %658 = vmatpush.msra.mxu3 %v328_v42  ;;  %v277_v51 = vand.u32 4294901760, %v276_v47 }
  0x37   : > { %329 = vmatpush.msra.mxu1 %v328_v42  ;;  %379 = vmatpush.msrb.mxu2 %v331_v19  ;;  %v285_v55 = vand.u32 4294901760, %v284_v52  ;;  %p804_p11 = pnand %p803_p10, %p799_p6 }
  0x38   : > { %659 = vmatpush.msra.mxu3 %v334_v46  ;;  %472 = vmatpush.msrb.mxu0 %v332_v27 }
  0x39   : > { %335 = vmatpush.msra.mxu1 %v334_v46  ;;  %278 = vmatmul.f32.vlgmr.msra.gmra.mxu0 %v277_v51 }
  0x3a   : > { %660 = vmatpush.msra.mxu3 %v340_v49  ;;  %382 = vmatpush.msrb.mxu2 %v1040_v20 }
  0x3b   : > { %351 = vmatmul.f32.vlgmr.msra.gmra.mxu3 %v1034_v17  ;;  %341 = vmatpush.msra.mxu1 %v340_v49 }
  0x3c   : > { %417 = vmatpush.msrb.mxu3 %v1007_v4  ;;  %343 = vmatmul.f32.vlgmr.msra.gmra.mxu1 %v1058_v31 }
  0x3d   : > { %507 = vmatpush.msrb.mxu1 %v1007_v4  ;;  %476 = vmatpush.msrb.mxu0 %v338_v29 }
  0x3e   : > { %302 = vmatmul.f32.gmra.mxu2 %v301_v53  ;;  %419 = vmatpush.msrb.mxu3 %v1009_v5 }
  0x3f   : > { %509 = vmatpush.msrb.mxu1 %v1009_v5  ;;  %237 = vperm.xlu1 %749, %v219_v54  }
  0x40   : > { %421 = vmatpush.msrb.mxu3 %v1011_v6  ;;  %227 = vperm.xlu0 %748, %v217_v56  }
  0x41   : > { %286 = vmatmul.f32.gmra.mxu0 %v285_v55  ;;  %511 = vmatpush.msrb.mxu1 %v1011_v6 }
  0x42   : > { %423 = vmatpush.msrb.mxu3 %v1019_v10 }
  0x43   : > { %355 = vmatmul.f32.gmra.mxu3 %v1042_v21  ;;  %513 = vmatpush.msrb.mxu1 %v1019_v10 }
  0x44   : > { %347 = vmatmul.f32.gmra.mxu1 %v1060_v32 }
  0x46   : > { %385 = vmatmul.f32.vlgmr.msrb.gmra.mxu2 %v274_v38 }
  0x49   : > { %478 = vmatmul.f32.vlgmr.msrb.gmra.mxu0 %v1058_v31 }
  0x4b   : > { %427 = vmatmul.f32.vlgmr.msrb.gmra.mxu3 %v275_v44 }
  0x4c   : > { %515 = vmatmul.f32.vlgmr.msrb.gmra.mxu1 %v1058_v31 }
  0x4e   : > { %390 = vmatmul.f32.gmra.mxu2 %v282_v39 }
  0x51   : > { %482 = vmatmul.f32.gmra.mxu0 %v1060_v32 }
  0x53   : > { %433 = vmatmul.f32.gmra.mxu3 %v283_v48 }
  0x54   : > { %519 = vmatmul.f32.gmra.mxu1 %v1060_v32 }
  0x56   : > { %395 = vmatmul.f32.gmra.mxu2 %v1048_v25 }
  0x59   : > { %486 = vmatmul.f32.gmra.mxu0 %v1034_v17 }
  0x5b   : > { %439 = vmatmul.f32.gmra.mxu3 %v291_v34 }
  0x5c   : > { %523 = vmatmul.f32.gmra.mxu1 %v1034_v17 }
  0x5e   : > { %400 = vmatmul.f32.gmra.mxu2 %v1056_v30 }
  0x61   : > { %490 = vmatmul.f32.gmra.mxu0 %v1042_v21 }
  0x63   : > { %445 = vmatmul.f32.gmra.mxu3 %v299_v43 }
  0x64   : > { %527 = vmatmul.f32.gmra.mxu1 %v1042_v21 }
  0x9e   : > { %v223_v0 = vpop.permute.xlu0 %222  ;;  %v233_v14 = vpop.permute.xlu1 %232 }
  0xb1   : > { %v238_v27 = vpop.permute.xlu1 %237 }
  0xb2   : > { %v228_v7 = vpop.permute.xlu0 %227 }
  0xb6   : > { %v279_v57 = vpop.f32.mrf.mxu0 }
  0xb7   : > { %v280_v2 = vadd.f32 %v279_v57, %v223_v0 }
  0xb9   : > { %v295_v58 = vpop.f32.mrf.mxu2  ;;  %v344_v59 = vpop.f32.mrf.mxu1 }
  0xba   : > { %v345_v6 = vadd.f32 %v344_v59, %v280_v2  ;;  %v296_v21 = vadd.f32 %v295_v58, %v233_v14 }
  0xbe   : > { %v352_v60 = vpop.f32.mrf.mxu3  ;;  %v287_v61 = vpop.f32.mrf.mxu0 }
  0xbf   : > { %v288_v10 = vadd.f32 %v287_v61, %v228_v7  ;;  %v353_v25 = vadd.f32 %v352_v60, %v296_v21 }
  0xc1   : > { %v303_v62 = vpop.f32.mrf.mxu2  ;;  %v348_v63 = vpop.f32.mrf.mxu1 }
  0xc2   : > { %v349_v16 = vadd.f32 %v348_v63, %v288_v10  ;;  %v304_v32 = vadd.f32 %v303_v62, %v238_v27 }
  0xc6   : > { %v356_v1 = vpop.f32.mrf.mxu3  ;;  %v479_v3 = vpop.f32.mrf.mxu0 }
  0xc7   : > { %v357_v36 = vadd.f32 %v356_v1, %v304_v32 }
  0xc9   : > { %v386_v4 = vpop.f32.mrf.mxu2  ;;  %v516_v5 = vpop.f32.mrf.mxu1 }
  0xca   : > { %v387_v8 = vadd.f32 %v386_v4, %v345_v6 }
  0xce   : > { %v428_v9 = vpop.f32.mrf.mxu3  ;;  %v483_v15 = vpop.f32.mrf.mxu0 }
  0xcf   : > { %v429_v11 = vadd.f32 %v428_v9, %v387_v8 }
  0xd1   : > { %v391_v12 = vpop.f32.mrf.mxu2  ;;  %v480_v13 = vadd.f32 %v479_v3, %v429_v11  ;;  %v520_v18 = vpop.f32.mrf.mxu1 }
  0xd2   : > { %v392_v19 = vadd.f32 %v391_v12, %v349_v16 }
  0xd3   : > { %v517_v17 = vadd.f32 %v516_v5, %v480_v13 }
  0xd5   : > { %531 = vst [vmem:[%s1108_s23] sm:$0xff] %v517_v17 }
  0xd6   : > { %v434_v20 = vpop.f32.mrf.mxu3  ;;  %v487_v28 = vpop.f32.mrf.mxu0 }
  0xd7   : > { %v435_v22 = vadd.f32 %v434_v20, %v392_v19 }
  0xd9   : > { %v396_v23 = vpop.f32.mrf.mxu2  ;;  %v484_v24 = vadd.f32 %v483_v15, %v435_v22  ;;  %v524_v31 = vpop.f32.mrf.mxu1 }
  0xda   : > { %v397_v29 = vadd.f32 %v396_v23, %v353_v25 }
  0xdb   : > { %v521_v26 = vadd.f32 %v520_v18, %v484_v24 }
  0xdd   : > { %532 = vst [vmem:[%s1108_s23 + $0x8] sm:$0xff] %v521_v26 }
  0xde   : > { %v440_v30 = vpop.f32.mrf.mxu3  ;;  %v491_v40 = vpop.f32.mrf.mxu0 }
  0xdf   : > { %v441_v33 = vadd.f32 %v440_v30, %v397_v29 }
  0xe1   : > { %v488_v34 = vadd.f32 %v487_v28, %v441_v33  ;;  %v401_v35 = vpop.f32.mrf.mxu2  ;;  %v528_v42 = vpop.f32.mrf.mxu1 }
  0xe2   : > { %v402_v38 = vadd.f32 %v401_v35, %v357_v36 }
  0xe3   : > { %v525_v37 = vadd.f32 %v524_v31, %v488_v34 }
  0xe5   : > { %533 = vst [vmem:[%s1108_s23 + $0x10] sm:$0xff] %v525_v37 }
  0xe6   : > { %v446_v39 = vpop.f32.mrf.mxu3 }
  0xe7   : > { %v447_v41 = vadd.f32 %v446_v39, %v402_v38 }
  0xe9   : > { %v492_v43 = vadd.f32 %v491_v40, %v447_v41 }
  0xeb   : > { %v529_v44 = vadd.f32 %v528_v42, %v492_v43 }
  0xed   : > { %534 = vst [vmem:[%s1108_s23 + $0x18] sm:$0xff] %v529_v44 }
  0xee   : > { %807 = shalt.err (!%p804_p11)
}
  0xef   : > { %s884_s26 = smov 128   ;;  %s885_s22 = smov 384  }
  0xf0   : > { %s886_s23 = smov 8  }
  0xf1   : > { %665 = dma.vmem_to_hbm [thread:$0]  (%p972_p9), %s550_s11, 512, %s552_s15, %s536_s20, %s884_s26, %s885_s22, %s886_s23  }
  0xf2 PF: > { %p676_p13 = scmp.ge.s32.totalorder %s878_s19, 2  ;;  %s566_s27 = sand.u32 1, %s850_s12  }
  0xf3   : > { %s567_s7 = scalar_lea.sflag [#allocation4], %s566_s27 }
  0xf4   : > { %p672_p0 = pnand %p676_p13, %p978_p12 }
  0xf6   : > { %p673_p1 = pneg %p672_p0 }
  0xf8   : > { %845 = dma.done.wait (%p673_p1), %s567_s7, 512  }
  0xf9   : > { %847 = vsyncadd (%p673_p1), %s567_s7, 4294966784  ;;  %s19_s19 = sadd.s32 1, %s878_s19   ;;  %s1172_s5 = sld [smem:[#allocation10_spill]] }
  0xfa   : > { %p16_p2 = scmp.ge.s32.totalorder %s19_s19, 8   ;;  %s1173_s28 = sld [smem:[#allocation8_spill]] }
  0xfb   : > { %s1174_s6 = sld [smem:[#allocation9_spill]]  ;;  %s1175_s12 = smov %s854_s13 }
  0xfc   : > { %s1176_s13 = smov %s858_s14  ;;  %s1178_s15 = smov %s870_s17 }
  0xfd   : > { %s1179_s16 = smov %s874_s18  ;;  %18 = sbr.rel (!%p16_p2) target bundleno = 7 (0x7), region = 77 }
  0xff   : > { %s1177_s14 = smov %s1172_s5 }
 0x100   : > { %s1180_s17 = smov %s1173_s28 }
 0x101   : > { %s1181_s18 = smov %s1174_s6 }
 0x102   :  { %573 = vsyncpa [#allocation3], 1 }
 0x103   :  { %575 = vsyncpa [#allocation3 + $0x1], 1 }
 0x104   :  { %576 = vsyncpa [#allocation4], 1 }
 0x105   :  { %578 = vsyncpa [#allocation4 + $0x1], 1 }

</bundles_post_ra>
